<compile_context>
chip_gen: v7x
topology: tpu7x:2x2x1
jax: 0.10.0
libtpu: 0.0.40
codegen_flags: <defaults>
</compile_context>

<pallas_src>
import math

import jax
import jax.numpy as jnp
from jax.experimental import pallas as pl
from jax.experimental.pallas import tpu as pltpu


# ---------------------------------------------------------------------------
# Kernels
# ---------------------------------------------------------------------------
def _rowstats_kernel(x_ref, sum_ref, sq_ref):
    """Per-row sum and sum-of-squares in f32.

    x_ref:   (row_tile, col_tile) block of the (N*C, H*W) view.
    sum_ref: (row_tile, 1) f32 output, resident across the column (reduction)
             grid axis (index_map constant along it).
    sq_ref:  (row_tile, 1) f32 output, same residency.
    """
    @pl.when(pl.program_id(1) == 0)
    def _():
        sum_ref[...] = jnp.zeros_like(sum_ref)
        sq_ref[...] = jnp.zeros_like(sq_ref)

    x = x_ref[...].astype(jnp.float32)           # explicit f32 accumulation
    sum_ref[...] += jnp.sum(x, axis=-1, keepdims=True)
    sq_ref[...] += jnp.sum(x * x, axis=-1, keepdims=True)


def _apply_kernel(x_ref, scale_ref, shift_ref, out_ref):
    """out = x * scale + shift  (scale/shift are per-row, broadcast over lanes)."""
    x = x_ref[...].astype(jnp.float32)
    out_ref[...] = (x * scale_ref[...] + shift_ref[...]).astype(out_ref.dtype)


# ---------------------------------------------------------------------------
# Tiling helpers
# ---------------------------------------------------------------------------
def _pick_tile(total, quantum, max_tile):
    """Largest tile <= max_tile that is a multiple of `quantum` and divides
    `total` exactly; falls back to the full extent (always legal)."""
    if total <= max_tile:
        return total
    t = (max_tile // quantum) * quantum
    while t >= quantum:
        if total % t == 0:
            return t
        t -= quantum
    return total  # awkward shape: single full-extent block


_ROW_TILE_MAX = 256     # sublane-dim tile cap
_COL_TILE_MAX = 2048    # lane-dim tile cap (multiple of 128)
_VMEM_LIMIT = 64 * 1024 * 1024
_COMPILER_PARAMS_RED = pltpu.CompilerParams(
    dimension_semantics=("parallel", "arbitrary"),
    vmem_limit_bytes=_VMEM_LIMIT,
)
_COMPILER_PARAMS_APPLY = pltpu.CompilerParams(
    dimension_semantics=("parallel", "parallel"),
    vmem_limit_bytes=_VMEM_LIMIT,
)


# ---------------------------------------------------------------------------
# Forward
# ---------------------------------------------------------------------------
def ibn_forward(x, *, first_fraction=0.5, inst_first=True,
                inst_weight=None, inst_bias=None,
                bn_weight=None, bn_bias=None, eps=1e-5):
    """Functional IBN forward matching the PyTorch module (training mode)."""
    N, C, H, W = x.shape
    h1 = int(math.floor(C * first_fraction))
    h2 = C - h1
    n_inst, n_bn = (h1, h2) if inst_first else (h2, h1)

    if inst_weight is None:
        inst_weight = jnp.ones((n_inst,), jnp.float32)
    if inst_bias is None:
        inst_bias = jnp.zeros((n_inst,), jnp.float32)
    if bn_weight is None:
        bn_weight = jnp.ones((n_bn,), jnp.float32)
    if bn_bias is None:
        bn_bias = jnp.zeros((n_bn,), jnp.float32)

    NC, HW = N * C, H * W
    x2d = x.reshape(NC, HW)                       # lane-dense view

    row_tile = _pick_tile(NC, 8, _ROW_TILE_MAX)
    col_tile = _pick_tile(HW, 128, _COL_TILE_MAX)
    grid = (NC // row_tile, HW // col_tile)

    # ---- Pass 1: per-(n,c) sum / sumsq reduction (f32) --------------------
    sums, sqs = pl.pallas_call(
        _rowstats_kernel,
        out_shape=(jax.ShapeDtypeStruct((NC, 1), jnp.float32),
                   jax.ShapeDtypeStruct((NC, 1), jnp.float32)),
        grid=grid,
        in_specs=[pl.BlockSpec((row_tile, col_tile), lambda i, j: (i, j))],
        out_specs=(pl.BlockSpec((row_tile, 1), lambda i, j: (i, 0)),
                   pl.BlockSpec((row_tile, 1), lambda i, j: (i, 0))),
        compiler_params=_COMPILER_PARAMS_RED,
    )(x2d)

    sums = sums.reshape(N, C)
    sqs = sqs.reshape(N, C)

    # ---- Tiny O(N*C) scalar math in plain JAX ------------------------------
    # Instance-norm stats: per (n, c), biased variance over H*W.
    in_mean = sums / HW
    in_var = jnp.maximum(sqs / HW - in_mean * in_mean, 0.0)
    # Batch-norm stats: per channel, biased variance over N*H*W.
    bn_mean = jnp.sum(sums, axis=0) / (N * HW)
    bn_var = jnp.maximum(jnp.sum(sqs, axis=0) / (N * HW) - bn_mean * bn_mean, 0.0)

    chan = jnp.arange(C)
    if inst_first:
        is_inst = chan < h1
        gamma = jnp.concatenate([inst_weight, bn_weight]).astype(jnp.float32)
        beta = jnp.concatenate([inst_bias, bn_bias]).astype(jnp.float32)
    else:
        is_inst = chan >= h1
        gamma = jnp.concatenate([bn_weight, inst_weight]).astype(jnp.float32)
        beta = jnp.concatenate([bn_bias, inst_bias]).astype(jnp.float32)

    mean_nc = jnp.where(is_inst[None, :], in_mean, bn_mean[None, :])
    var_nc = jnp.where(is_inst[None, :], in_var, bn_var[None, :])
    inv_nc = jax.lax.rsqrt(var_nc + eps)
    scale_nc = gamma[None, :] * inv_nc                  # (N, C)
    shift_nc = beta[None, :] - mean_nc * scale_nc       # (N, C)

    scale = scale_nc.reshape(NC, 1).astype(jnp.float32)
    shift = shift_nc.reshape(NC, 1).astype(jnp.float32)

    # ---- Pass 2: tiled elementwise normalize-apply -------------------------
    out2d = pl.pallas_call(
        _apply_kernel,
        out_shape=jax.ShapeDtypeStruct((NC, HW), x.dtype),
        grid=grid,
        in_specs=[
            pl.BlockSpec((row_tile, col_tile), lambda i, j: (i, j)),
            pl.BlockSpec((row_tile, 1), lambda i, j: (i, 0)),
            pl.BlockSpec((row_tile, 1), lambda i, j: (i, 0)),
        ],
        out_specs=pl.BlockSpec((row_tile, col_tile), lambda i, j: (i, j)),
        compiler_params=_COMPILER_PARAMS_APPLY,
    )(x2d, scale, shift)

    return out2d.reshape(N, C, H, W)


# ---------------------------------------------------------------------------
# Pure-JAX reference (mirrors the PyTorch module in training mode)
# ---------------------------------------------------------------------------
def _ibn_ref(x, h1, inst_first, iw, ib, bw, bb, eps=1e-5):
    x1, x2 = x[:, :h1], x[:, h1:]

    def inorm(z, w, b):
        m = z.mean(axis=(2, 3), keepdims=True)
        v = z.var(axis=(2, 3), keepdims=True)
        return (z - m) / jnp.sqrt(v + eps) * w[None, :, None, None] + b[None, :, None, None]

    def bnorm(z, w, b):
        m = z.mean(axis=(0, 2, 3), keepdims=True)
        v = z.var(axis=(0, 2, 3), keepdims=True)
        return (z - m) / jnp.sqrt(v + eps) * w[None, :, None, None] + b[None, :, None, None]

    if inst_first:
        return jnp.concatenate([inorm(x1, iw, ib), bnorm(x2, bw, bb)], axis=1)
    return jnp.concatenate([bnorm(x1, bw, bb), inorm(x2, iw, ib)], axis=1)


if __name__ == "__main__":
    key = jax.random.PRNGKey(0)
    kx, k1, k2, k3, k4 = jax.random.split(key, 5)

    N, C, H, W = 2, 4, 16, 16
    h1 = C // 2
    x = jax.random.normal(kx, (N, C, H, W), dtype=jnp.float32)

    iw = 1.0 + 0.1 * jax.random.normal(k1, (h1,), jnp.float32)
    ib = 0.1 * jax.random.normal(k2, (h1,), jnp.float32)
    bw = 1.0 + 0.1 * jax.random.normal(k3, (C - h1,), jnp.float32)
    bb = 0.1 * jax.random.normal(k4, (C - h1,), jnp.float32)

    # inst_first=True
    out = ibn_forward(x, inst_first=True,
                      inst_weight=iw, inst_bias=ib, bn_weight=bw, bn_bias=bb)
    jax.block_until_ready(out)
    ref = _ibn_ref(x, h1, True, iw, ib, bw, bb)
    assert jnp.allclose(out, ref, atol=2e-4, rtol=2e-4), "inst_first=True mismatch"

    # inst_first=False (same split sizes, so weights are reusable)
    out2 = ibn_forward(x, inst_first=False,
                       inst_weight=iw, inst_bias=ib, bn_weight=bw, bn_bias=bb)
    jax.block_until_ready(out2)
    ref2 = _ibn_ref(x, h1, False, iw, ib, bw, bb)
    assert jnp.allclose(out2, ref2, atol=2e-4, rtol=2e-4), "inst_first=False mismatch"

    print("KERNEL_OK")
</pallas_src>

<mosaic_0001>
module attributes {stable_mosaic.version = 11 : i64} {
  func.func @_rowstats_kernel(%arg0: i32, %arg1: i32, %arg2: memref<8x256xf32, #tpu.memory_space<vmem>>, %arg3: memref<8x1xf32, #tpu.memory_space<vmem>>, %arg4: memref<8x1xf32, #tpu.memory_space<vmem>>) attributes {dimension_semantics = [#tpu.dimension_semantics<parallel>, #tpu.dimension_semantics<arbitrary>], iteration_bounds = array<i64: 1, 1>, scalar_prefetch = 0 : i64, scratch_operands = 0 : i64, tpu.core_type = #tpu.core_type<tc>, window_params = [{transform_indices = @transform_0, window_bounds = array<i64: 8, 256>}, {transform_indices = @transform_1, window_bounds = array<i64: 8, 1>}, {transform_indices = @transform_2, window_bounds = array<i64: 8, 1>}]} {
    %c0_i32 = arith.constant 0 : i32
    %0 = arith.cmpi eq, %arg1, %c0_i32 : i32
    %1 = arith.extui %0 : i1 to i32
    %c0_i32_0 = arith.constant 0 : i32
    %2 = arith.cmpi ne, %1, %c0_i32_0 : i32
    scf.if %2 {
      %cst_11 = arith.constant 0.000000e+00 : f32
      %15 = vector.broadcast %cst_11 : f32 to vector<8x1xf32>
      %c0_12 = arith.constant 0 : index
      %c0_13 = arith.constant 0 : index
      %16 = vector.load %arg3[%c0_12, %c0_13] : memref<8x1xf32, #tpu.memory_space<vmem>>, vector<8x1xf32>
      tpu.vector_store %arg3[%c0_12, %c0_13], %15 {strides = array<i32>} : memref<8x1xf32, #tpu.memory_space<vmem>>, vector<8x1xf32>,
      %cst_14 = arith.constant 0.000000e+00 : f32
      %17 = vector.broadcast %cst_14 : f32 to vector<8x1xf32>
      %c0_15 = arith.constant 0 : index
      %c0_16 = arith.constant 0 : index
      %18 = vector.load %arg4[%c0_15, %c0_16] : memref<8x1xf32, #tpu.memory_space<vmem>>, vector<8x1xf32>
      tpu.vector_store %arg4[%c0_15, %c0_16], %17 {strides = array<i32>} : memref<8x1xf32, #tpu.memory_space<vmem>>, vector<8x1xf32>,
    } else {
    }
    %c0 = arith.constant 0 : index
    %c0_1 = arith.constant 0 : index
    %3 = vector.load %arg2[%c0, %c0_1] : memref<8x256xf32, #tpu.memory_space<vmem>>, vector<8x256xf32>
    %c0_2 = arith.constant 0 : index
    %c0_3 = arith.constant 0 : index
    %4 = vector.load %arg3[%c0_2, %c0_3] : memref<8x1xf32, #tpu.memory_space<vmem>>, vector<8x1xf32>
    %cst = arith.constant dense<0.000000e+00> : vector<8xf32>
    %5 = vector.multi_reduction <add>, %3, %cst [1] : vector<8x256xf32> to vector<8xf32>
    %6 = vector.shape_cast %5 : vector<8xf32> to vector<8x1xf32>
    %7 = arith.addf %4, %6 : vector<8x1xf32>
    %c0_4 = arith.constant 0 : index
    %c0_5 = arith.constant 0 : index
    %8 = vector.load %arg3[%c0_4, %c0_5] : memref<8x1xf32, #tpu.memory_space<vmem>>, vector<8x1xf32>
    tpu.vector_store %arg3[%c0_4, %c0_5], %7 {strides = array<i32>} : memref<8x1xf32, #tpu.memory_space<vmem>>, vector<8x1xf32>,
    %c0_6 = arith.constant 0 : index
    %c0_7 = arith.constant 0 : index
    %9 = vector.load %arg4[%c0_6, %c0_7] : memref<8x1xf32, #tpu.memory_space<vmem>>, vector<8x1xf32>
    %10 = arith.mulf %3, %3 : vector<8x256xf32>
    %cst_8 = arith.constant dense<0.000000e+00> : vector<8xf32>
    %11 = vector.multi_reduction <add>, %10, %cst_8 [1] : vector<8x256xf32> to vector<8xf32>
    %12 = vector.shape_cast %11 : vector<8xf32> to vector<8x1xf32>
    %13 = arith.addf %9, %12 : vector<8x1xf32>
    %c0_9 = arith.constant 0 : index
    %c0_10 = arith.constant 0 : index
    %14 = vector.load %arg4[%c0_9, %c0_10] : memref<8x1xf32, #tpu.memory_space<vmem>>, vector<8x1xf32>
    tpu.vector_store %arg4[%c0_9, %c0_10], %13 {strides = array<i32>} : memref<8x1xf32, #tpu.memory_space<vmem>>, vector<8x1xf32>,
    return
  }
  func.func @transform_0(%arg0: i32, %arg1: i32) -> (i32, i32) {
    %c0_i32 = arith.constant 0 : i32
    return %arg0, %arg1 : i32, i32
  }
  func.func @transform_1(%arg0: i32, %arg1: i32) -> (i32, i32) {
    %c0_i32 = arith.constant 0 : i32
    %c0_i32_0 = arith.constant 0 : i32
    return %arg0, %c0_i32 : i32, i32
  }
  func.func @transform_2(%arg0: i32, %arg1: i32) -> (i32, i32) {
    %c0_i32 = arith.constant 0 : i32
    %c0_i32_0 = arith.constant 0 : i32
    return %arg0, %c0_i32 : i32, i32
  }
}

</mosaic_0001>

<bundles_post_ra>
// kernel: tpu_custom_call.1
= control target key start
LH: loop header
LB: loop body
LE: loop exit
PB: predicated region body
PF: predicated region fallthrough
CT: control target
= control target key end

     0   :  { %8 = vsyncpa [#allocation3], 0  ;;  %s212_s0 = inlined_call_operand.hbm [shape: f32[8,256], index: 0, kind: input, shape index: {}]   ;;  %s213_s1 = inlined_call_operand.hbm [shape: f32[8,1], index: 1, kind: output, shape index: {0}]   ;;  %s214_s2 = inlined_call_operand.hbm [shape: f32[8,1], index: 2, kind: output, shape index: {1}]  }
   0x1   :  { %9 = vsyncpa [#allocation4], 0 }
   0x2   :  { %10 = vsyncpa [#allocation7], 0  ;;  %s153_s9 = smov [#allocation2]   ;;  %s81_s13 = scalar_lea.hbm %s212_s0, 256 }
   0x3   :  { %s17_s10 = sshll.u32 %s153_s9, 4  ;;  %p82_p0 = scmp.ne.s32.totalorder %s212_s0, %s81_s13  ;;  %s18_s10 = int_to_ptr.vmem [resolvable:$true] %s17_s10 }
   0x4   :  { %p85_p1 = scmp.lt.u32.totalorder %s81_s13, %s212_s0 }
   0x6   :  { %p87_p2 = pnand %p85_p1, %p82_p0 }
   0x8   :  { %90 = shalt.err (!%p87_p2)
}
   0x9   :  { %s91_s18 = scalar_lea.vmem %s18_s10, 256  ;;  %p96_p4 = scmp.lt.s32.totalorder %s18_s10, %s18_s10 }
   0xa   :  { %p92_p3 = scmp.ne.s32.totalorder %s18_s10, %s91_s18  ;;  %p97_p5 = scmp.lt.s32.totalorder %s91_s18, %s91_s18 }
   0xc   :  { %p98_p6 = por %p97_p5, %p96_p4 }
   0xe   :  { %p99_p7 = pnand %p98_p6, %p92_p3 }
  0x10   :  { %102 = shalt.err (!%p99_p7)
}
  0x11   :  { %20 = dma.hbm_to_vmem [thread:$0]  %s212_s0, 256, %s18_s10, [#allocation3]  }
  0x12   :  { %147 = dma.done.wait [#allocation3], 256  }
  0x13   :  { %148 = vsyncadd [#allocation3], 4294967040  ;;  %vm28_vm0 = vcmask 7168   ;;  %v154_v0 = vmov 0.0   ;;  %v31_v1 = vld [vmem:[#allocation2] sm:$0xff]  ;;  %v32_v2 = vld [vmem:[#allocation2 + $0x8] sm:$0xff] }
  0x14   :  { %29 = vst.msk [vmem:[#allocation5] sm:$0xff] %vm28_vm0, %v154_v0  ;;  %30 = vst.msk [vmem:[#allocation6] sm:$0xff] %vm28_vm0, %v154_v0  ;;  %v34_v3 = vadd.f32 %v32_v2, %v31_v1  ;;  %v41_v4 = vmul.f32 %v31_v1, %v31_v1  ;;  %v42_v5 = vmul.f32 %v32_v2, %v32_v2  ;;  %s155_s21 = smov [#allocation5]   ;;  %s156_s0 = smov [#allocation6]  }
  0x15   :  { %s54_s22 = sshll.u32 %s155_s21, 4  ;;  %s64_s23 = sshll.u32 %s156_s0, 4  ;;  %s55_s22 = int_to_ptr.vmem [resolvable:$true] %s54_s22  ;;  %s65_s23 = int_to_ptr.vmem [resolvable:$true] %s64_s23 }
  0x16   :  { %35 = vadd.xlane.f32.xlu0 %v34_v3  ;;  %v43_v6 = vadd.f32 %v42_v5, %v41_v4  ;;  %s103_s24 = scalar_lea.vmem %s55_s22, 128  ;;  %p108_p9 = scmp.lt.s32.totalorder %s55_s22, %s55_s22 }
  0x17   :  { %p104_p8 = scmp.ne.s32.totalorder %s55_s22, %s103_s24  ;;  %p109_p10 = scmp.lt.s32.totalorder %s103_s24, %s103_s24 }
  0x19   :  { %p110_p11 = por %p109_p10, %p108_p9 }
  0x1a   :  { %44 = vadd.xlane.f32.xlu0 %v43_v6 }
  0x1b   :  { %v33_v7 = vld [vmem:[#allocation5] sm:$0xff]  ;;  %v40_v10 = vld [vmem:[#allocation6] sm:$0xff]  ;;  %p111_p12 = pnand %p110_p11, %p104_p8 }
  0xa3   :  { %v36_v8 = vpop.xlane.xlu0 %35 }
  0xa4   :  { %v37_v9 = vadd.f32 %v36_v8, %v33_v7 }
  0xa6   :  { %39 = vst.msk [vmem:[#allocation5] sm:$0xff] %vm28_vm0, %v37_v9 }
  0xa7   :  { %v45_v11 = vpop.xlane.xlu0 %44 }
  0xa8   :  { %114 = shalt.err (!%p111_p12)
}
  0xa9   :  { %s115_s27 = scalar_lea.hbm %s213_s1, 128 }
  0xaa   :  { %p116_p13 = scmp.ne.s32.totalorder %s213_s1, %s115_s27  ;;  %p119_p0 = scmp.lt.u32.totalorder %s115_s27, %s213_s1 }
  0xac   :  { %p121_p1 = pnand %p119_p0, %p116_p13 }
  0xae   :  { %124 = shalt.err (!%p121_p1)
}
  0xaf   :  { %57 = dma.vmem_to_hbm [thread:$0]  %s55_s22, 128, %s213_s1, [#allocation4]   ;;  %v46_v12 = vadd.f32 %v45_v11, %v40_v10 }
  0xb0   :  { %s125_s6 = scalar_lea.vmem %s65_s23, 128  ;;  %p130_p3 = scmp.lt.s32.totalorder %s65_s23, %s65_s23 }
  0xb1   :  { %47 = vst.msk [vmem:[#allocation6] sm:$0xff] %vm28_vm0, %v46_v12  ;;  %p126_p2 = scmp.ne.s32.totalorder %s65_s23, %s125_s6  ;;  %p131_p4 = scmp.lt.s32.totalorder %s125_s6, %s125_s6 }
  0xb3   :  { %p132_p5 = por %p131_p4, %p130_p3 }
  0xb5   :  { %p133_p6 = pnand %p132_p5, %p126_p2 }
  0xb7   :  { %136 = shalt.err (!%p133_p6)
}
  0xb8   :  { %s137_s9 = scalar_lea.hbm %s214_s2, 128 }
  0xb9   :  { %p138_p7 = scmp.ne.s32.totalorder %s214_s2, %s137_s9  ;;  %p141_p8 = scmp.lt.u32.totalorder %s137_s9, %s214_s2 }
  0xbb   :  { %p143_p9 = pnand %p141_p8, %p138_p7 }
  0xbd   :  { %146 = shalt.err (!%p143_p9)
}
  0xbe   :  { %67 = dma.vmem_to_hbm [thread:$0]  %s65_s23, 128, %s214_s2, [#allocation7]  }
  0xbf   :  { %149 = dma.done.wait [#allocation4], 128  }
  0xc0   :  { %150 = vsyncadd [#allocation4], 4294967168 }
  0xc1   :  { %151 = dma.done.wait [#allocation7], 128  }
  0xc2   :  { %152 = vsyncadd [#allocation7], 4294967168 }
  0xc3   :  { %74 = vsyncpa [#allocation3], 1 }
  0xc4   :  { %75 = vsyncpa [#allocation4], 1 }
  0xc5   :  { %76 = vsyncpa [#allocation7], 1 }

</bundles_post_ra>
